<compile_context>
chip_gen: v7x
topology: tpu7x:2x2x1
jax: 0.10.0
libtpu: 0.0.40
codegen_flags: <defaults>
</compile_context>

<pallas_src>
import jax
import jax.numpy as jnp
import numpy as np
from jax import lax
from jax.experimental import pallas as pl
from jax.experimental.pallas import tpu as pltpu

_PAD = 8  # sublane-aligned top padding of the VMEM slab (one f32 tile row)


# ------------------------- host-side weight prep ---------------------------

def _stacked_banded_weights(w_hwio, W):
    """HWIO (3,3,Cin,Cout) -> (3*W*Cin, W*Cout) K-stacked banded matrix.

    Row-block dy, entry [s*Cin+ci, x*Cout+co] = w[dy, dx, ci, co] with
    s = x + dx - 1 (entries with s outside [0, W) absent -> SAME padding in x).
    """
    _, _, Cin, Cout = w_hwio.shape
    mats = []
    for dy in range(3):
        acc = jnp.zeros((W * Cin, W * Cout), jnp.float32)
        for dx in range(3):
            E = jnp.eye(W, W, k=1 - dx, dtype=jnp.float32)  # E[s,x]=1 iff s==x+dx-1
            acc = acc + jnp.einsum("sx,io->sixo", E, w_hwio[dy, dx]).reshape(
                W * Cin, W * Cout)
        mats.append(acc)
    return jnp.concatenate(mats, axis=0)                    # (3*W*Cin, W*Cout)


def _block_diag_weight(wsc, W):
    """1x1-conv weight (Cin, Cout) -> block-diagonal (W*Cin, W*Cout)."""
    Cin, Cout = wsc.shape
    E = jnp.eye(W, dtype=jnp.float32)
    return jnp.einsum("sx,io->sixo", E, wsc.astype(jnp.float32)).reshape(
        W * Cin, W * Cout)


def _tile_bias(b, W):
    """(Cout,) -> (1, W*Cout) bias tiled to the lane-dense layout."""
    return jnp.tile(b.astype(jnp.float32), W).reshape(1, W * b.shape[0])


# ------------------------------ kernel helpers ------------------------------

def _tap_operands(center_f32, slab_ref, H):
    """Write the slab once and return the boundary-masked (row-1, row+1) taps.

    Images are stacked contiguously along M (= B_tile*H); per-image vertical
    SAME padding is enforced by the (row % H) masks, so taps never leak across
    images (or across grid-step boundaries / unwritten halo rows).
    """
    M, WC = center_f32.shape
    slab_ref[_PAD:_PAD + M, :] = center_f32                  # aligned store
    r = lax.broadcasted_iota(jnp.int32, (M, WC), 0) % H
    zero = jnp.zeros_like(center_f32)
    up = jnp.where(r != 0, slab_ref[_PAD - 1:_PAD - 1 + M, :], zero)   # row h-1
    dn = jnp.where(r != H - 1, slab_ref[_PAD + 1:_PAD + 1 + M, :], zero)  # row h+1
    return up, dn


def _banded_conv(center_bf16, up_f32, dn_f32, w_ref):
    """3x3 conv as 3 MXU matmuls against one K-stacked banded weight ref."""
    WC = center_bf16.shape[-1]
    acc = jnp.dot(center_bf16, w_ref[WC:2 * WC, :],
                  preferred_element_type=jnp.float32)
    acc = acc + jnp.dot(up_f32.astype(jnp.bfloat16), w_ref[0:WC, :],
                        preferred_element_type=jnp.float32)
    acc = acc + jnp.dot(dn_f32.astype(jnp.bfloat16), w_ref[2 * WC:, :],
                        preferred_element_type=jnp.float32)
    return acc


def _make_proj_kernel(H, WCout):
    """Variant with a 1x1-conv shortcut fused along N into conv1's weight."""
    def kernel(x_ref, w1_ref, b1_ref, w2_ref, b2_ref, o_ref, xs1, xs2):
        xb = x_ref[...]                                      # (M, WCin) bf16
        xf = xb.astype(jnp.float32)
        up1, dn1 = _tap_operands(xf, xs1, H)
        # One matmul pass: lanes [0, WCout) = conv1 pre-activation,
        # lanes [WCout, 2*WCout) = 1x1 shortcut (biases fused too).
        pre = _banded_conv(xb, up1, dn1, w1_ref) + b1_ref[...]
        out1 = jnp.maximum(pre[:, :WCout], 0.0)              # conv1+b1+ReLU
        sc = pre[:, WCout:]                                  # shortcut (+bsc)
        up2, dn2 = _tap_operands(out1, xs2, H)
        out2 = jnp.maximum(
            _banded_conv(out1.astype(jnp.bfloat16), up2, dn2, w2_ref)
            + b2_ref[...], 0.0)                              # conv2+b2+ReLU
        o_ref[...] = jnp.maximum(out2 + sc, 0.0)
    return kernel


def _make_identity_kernel(H):
    """Variant with an identity shortcut (no shortcut matmul at all)."""
    def kernel(x_ref, w1_ref, b1_ref, w2_ref, b2_ref, o_ref, xs1, xs2):
        xb = x_ref[...]                                      # (M, WC) bf16
        xf = xb.astype(jnp.float32)
        up1, dn1 = _tap_operands(xf, xs1, H)
        out1 = jnp.maximum(
            _banded_conv(xb, up1, dn1, w1_ref) + b1_ref[...], 0.0)
        up2, dn2 = _tap_operands(out1, xs2, H)
        out2 = jnp.maximum(
            _banded_conv(out1.astype(jnp.bfloat16), up2, dn2, w2_ref)
            + b2_ref[...], 0.0)
        o_ref[...] = jnp.maximum(out2 + xf, 0.0)
    return kernel


# -------------------------------- wrapper ----------------------------------

def _pick_batch_tile(N, H, target_rows=256):
    """Largest divisor of N with B_tile*H <= target_rows (MXU row fill)."""
    bt = max(1, min(N, max(1, target_rows // H)))
    while N % bt:
        bt -= 1
    return bt


def skip_connect_forward_nhwc(x_nhwc, params, stride=1, expansion=1):
    """Fused SkipConnect forward: NHWC in -> NHWC out (lane-dense kernel)."""
    assert stride == 1, "only stride=1 implemented"  # TODO(synk): stride>1
    assert expansion == 1, "module only add-broadcasts cleanly for expansion=1"
    N, H, W, Cin = x_nhwc.shape
    Cout = params["w1"].shape[-1]
    WCin, WCout = W * Cin, W * Cout

    # Lane-dense bf16 activations: (N*H, W*Cin).
    x2d = x_nhwc.reshape(N * H, WCin).astype(jnp.bfloat16)

    w1s = _stacked_banded_weights(params["w1"], W)           # (3*WCin, WCout)
    w2s = _stacked_banded_weights(params["w2"], W)           # (3*WCout, WCout)
    b1t = _tile_bias(params["b1"], W)                        # (1, WCout)
    b2t = _tile_bias(params["b2"], W)                        # (1, WCout)

    if "wsc" in params:
        # Fuse the 1x1 shortcut along N: weight (3*WCin, 2*WCout); the
        # shortcut's K rows live only in the centre (dy=1, unshifted) block.
        wscb = _block_diag_weight(params["wsc"], W)          # (WCin, WCout)
        w1f = jnp.zeros((3 * WCin, 2 * WCout), jnp.float32)
        w1f = w1f.at[:, :WCout].set(w1s)
        w1f = w1f.at[WCin:2 * WCin, WCout:].set(wscb)
        b1f = jnp.concatenate([b1t, _tile_bias(params["bsc"], W)], axis=1)
        w1_in, b1_in = w1f.astype(jnp.bfloat16), b1f
        kernel = _make_proj_kernel(H, WCout)
    else:
        assert Cin == Cout, "identity shortcut requires Cin == Cout"
        w1_in, b1_in = w1s.astype(jnp.bfloat16), b1t
        kernel = _make_identity_kernel(H)

    w2_in = w2s.astype(jnp.bfloat16)

    B_tile = _pick_batch_tile(N, H)
    M = B_tile * H

    out2d = pl.pallas_call(
        kernel,
        out_shape=jax.ShapeDtypeStruct((N * H, WCout), jnp.float32),
        grid=(N // B_tile,),
        in_specs=[
            pl.BlockSpec((M, WCin), lambda n: (n, 0)),
            pl.BlockSpec(w1_in.shape, lambda n: (0, 0)),
            pl.BlockSpec(b1_in.shape, lambda n: (0, 0)),
            pl.BlockSpec(w2_in.shape, lambda n: (0, 0)),
            pl.BlockSpec(b2t.shape, lambda n: (0, 0)),
        ],
        out_specs=pl.BlockSpec((M, WCout), lambda n: (n, 0)),
        scratch_shapes=[
            pltpu.VMEM((M + 2 * _PAD, WCin), jnp.float32),
            pltpu.VMEM((M + 2 * _PAD, WCout), jnp.float32),
        ],
        compiler_params=pltpu.CompilerParams(
            dimension_semantics=("parallel",)),
    )(x2d, w1_in, b1_in, w2_in, b2t)

    return out2d.reshape(N, H, W, Cout)


def skip_connect_forward_nchw(x_nchw, params, stride=1, expansion=1):
    """Torch-layout adapter (NCHW in/out). In a full network prefer the NHWC
    entry point so XLA does not add full-tensor transposes around each block."""
    x = jnp.transpose(x_nchw, (0, 2, 3, 1))
    y = skip_connect_forward_nhwc(x, params, stride, expansion)
    return jnp.transpose(y, (0, 3, 1, 2))


skip_connect_nhwc_jit = jax.jit(
    skip_connect_forward_nhwc, static_argnames=("stride", "expansion"))
skip_connect_nchw_jit = jax.jit(
    skip_connect_forward_nchw, static_argnames=("stride", "expansion"))


# ------------------------------- reference ---------------------------------

def ref_forward_nhwc(x, params):
    dn = ("NHWC", "HWIO", "NHWC")
    o = lax.conv_general_dilated(x, params["w1"], (1, 1), "SAME",
                                 dimension_numbers=dn) + params["b1"]
    o = jnp.maximum(o, 0.0)
    o = lax.conv_general_dilated(o, params["w2"], (1, 1), "SAME",
                                 dimension_numbers=dn) + params["b2"]
    o = jnp.maximum(o, 0.0)
    if "wsc" in params:
        sc = lax.conv_general_dilated(x, params["wsc"][None, None], (1, 1),
                                      "VALID",
                                      dimension_numbers=dn) + params["bsc"]
    else:
        sc = x
    return jnp.maximum(o + sc, 0.0)


# --------------------------------- main -------------------------------------

def _uniform(key, shape, fan_in):
    bound = 1.0 / np.sqrt(fan_in)
    return jax.random.uniform(key, shape, jnp.float32, -bound, bound)


if __name__ == "__main__":
    key = jax.random.PRNGKey(0)
    ks = jax.random.split(key, 10)

    # ---- case 1: 1x1-conv shortcut (Cin != Cout), torch-style NCHW API ----
    N, Cin, H, W, Cout = 2, 4, 16, 16, 8
    params = {
        "w1": _uniform(ks[0], (3, 3, Cin, Cout), Cin * 9),    # HWIO
        "b1": _uniform(ks[1], (Cout,), Cin * 9),
        "w2": _uniform(ks[2], (3, 3, Cout, Cout), Cout * 9),
        "b2": _uniform(ks[3], (Cout,), Cout * 9),
        "wsc": _uniform(ks[4], (Cin, Cout), Cin),             # 1x1 shortcut
        "bsc": _uniform(ks[5], (Cout,), Cin),
    }
    x_nchw = jax.random.normal(ks[6], (N, Cin, H, W), jnp.float32)
    out1 = jax.block_until_ready(skip_connect_nchw_jit(x_nchw, params))
    ref1 = jnp.transpose(
        ref_forward_nhwc(jnp.transpose(x_nchw, (0, 2, 3, 1)), params),
        (0, 3, 1, 2))
    np.testing.assert_allclose(np.asarray(out1), np.asarray(ref1),
                               rtol=3e-2, atol=3e-2)          # bf16 MXU path

    # ---- case 2: identity shortcut (Cin == Cout), lane-dense NHWC API ----
    Cin2 = Cout2 = 8
    params2 = {
        "w1": _uniform(ks[7], (3, 3, Cin2, Cout2), Cin2 * 9),
        "b1": _uniform(ks[8], (Cout2,), Cin2 * 9),
        "w2": _uniform(ks[9], (3, 3, Cout2, Cout2), Cout2 * 9),
        "b2": _uniform(ks[0], (Cout2,), Cout2 * 9),
    }
    x_nhwc = jax.random.normal(ks[1], (N, H, W, Cin2), jnp.float32)
    out2 = jax.block_until_ready(skip_connect_nhwc_jit(x_nhwc, params2))
    ref2 = jax.block_until_ready(ref_forward_nhwc(x_nhwc, params2))
    np.testing.assert_allclose(np.asarray(out2), np.asarray(ref2),
                               rtol=3e-2, atol=3e-2)

    print("KERNEL_OK")
</pallas_src>

<mosaic_0001>
module attributes {stable_mosaic.version = 11 : i64} {
  func.func @kernel(%arg0: i32, %arg1: memref<32x64xbf16, #tpu.memory_space<vmem>>, %arg2: memref<192x256xbf16, #tpu.memory_space<vmem>>, %arg3: memref<1x256xf32, #tpu.memory_space<vmem>>, %arg4: memref<384x128xbf16, #tpu.memory_space<vmem>>, %arg5: memref<1x128xf32, #tpu.memory_space<vmem>>, %arg6: memref<32x128xf32, #tpu.memory_space<vmem>>, %arg7: memref<48x64xf32, #tpu.memory_space<vmem>>, %arg8: memref<48x128xf32, #tpu.memory_space<vmem>>) attributes {dimension_semantics = [#tpu.dimension_semantics<parallel>], iteration_bounds = array<i64: 1>, scalar_prefetch = 0 : i64, scratch_operands = 2 : i64, tpu.core_type = #tpu.core_type<tc>, window_params = [{transform_indices = @transform_0, window_bounds = array<i64: 32, 64>}, {pipeline_mode = #tpu.pipeline_mode<synchronous>, transform_indices = @transform_1, window_bounds = array<i64: 192, 256>}, {pipeline_mode = #tpu.pipeline_mode<synchronous>, transform_indices = @transform_2, window_bounds = array<i64: 1, 256>}, {pipeline_mode = #tpu.pipeline_mode<synchronous>, transform_indices = @transform_3, window_bounds = array<i64: 384, 128>}, {pipeline_mode = #tpu.pipeline_mode<synchronous>, transform_indices = @transform_4, window_bounds = array<i64: 1, 128>}, {transform_indices = @transform_5, window_bounds = array<i64: 32, 128>}]} {
    %c0 = arith.constant 0 : index
    %c0_0 = arith.constant 0 : index
    %0 = vector.load %arg1[%c0, %c0_0] : memref<32x64xbf16, #tpu.memory_space<vmem>>, vector<32x64xbf16>
    %1 = arith.extf %0 : vector<32x64xbf16> to vector<32x64xf32>
    %c8 = arith.constant 8 : index
    %c0_1 = arith.constant 0 : index
    %2 = vector.load %arg7[%c8, %c0_1] : memref<48x64xf32, #tpu.memory_space<vmem>>, vector<32x64xf32>
    tpu.vector_store %arg7[%c8, %c0_1], %1 {strides = array<i32>} : memref<48x64xf32, #tpu.memory_space<vmem>>, vector<32x64xf32>,
    %3 = tpu.iota {dimensions = array<i32: 0>} : vector<32x64xi32>
    %c16_i32 = arith.constant 16 : i32
    %c0_i32 = arith.constant 0 : i32
    %4 = arith.cmpi eq, %c16_i32, %c0_i32 : i32
    %c1_i32 = arith.constant 1 : i32
    %5 = arith.select %4, %c1_i32, %c16_i32 : i32
    %6 = vector.broadcast %5 : i32 to vector<32x64xi32>
    %7 = arith.remsi %3, %6 : vector<32x64xi32>
    %c0_i32_2 = arith.constant 0 : i32
    %8 = vector.broadcast %c0_i32_2 : i32 to vector<32x64xi32>
    %9 = arith.cmpi ne, %7, %8 : vector<32x64xi32>
    %c0_i32_3 = arith.constant 0 : i32
    %10 = vector.broadcast %c0_i32_3 : i32 to vector<32x64xi32>
    %11 = arith.cmpi slt, %7, %10 : vector<32x64xi32>
    %c0_i32_4 = arith.constant 0 : i32
    %12 = arith.cmpi slt, %5, %c0_i32_4 : i32
    %13 = vector.broadcast %12 : i1 to vector<32x64xi1>
    %14 = vector.broadcast %13 : vector<32x64xi1> to vector<32x64xi1>
    %15 = arith.xori %11, %14 : vector<32x64xi1>
    %16 = arith.andi %15, %9 : vector<32x64xi1>
    %17 = vector.broadcast %5 : i32 to vector<32x64xi32>
    %18 = arith.addi %7, %17 : vector<32x64xi32>
    %19 = arith.select %16, %18, %7 : vector<32x64xi1>, vector<32x64xi32>
    %cst = arith.constant 0.000000e+00 : f32
    %20 = vector.broadcast %cst : f32 to vector<32x64xf32>
    %c0_i32_5 = arith.constant 0 : i32
    %21 = vector.broadcast %c0_i32_5 : i32 to vector<32x64xi32>
    %22 = arith.cmpi ne, %19, %21 : vector<32x64xi32>
    %c7 = arith.constant 7 : index
    %c0_6 = arith.constant 0 : index
    %23 = vector.load %arg7[%c7, %c0_6] : memref<48x64xf32, #tpu.memory_space<vmem>>, vector<32x64xf32>
    %24 = arith.select %22, %23, %20 : vector<32x64xi1>, vector<32x64xf32>
    %c15_i32 = arith.constant 15 : i32
    %25 = vector.broadcast %c15_i32 : i32 to vector<32x64xi32>
    %26 = arith.cmpi ne, %19, %25 : vector<32x64xi32>
    %c9 = arith.constant 9 : index
    %c0_7 = arith.constant 0 : index
    %27 = vector.load %arg7[%c9, %c0_7] : memref<48x64xf32, #tpu.memory_space<vmem>>, vector<32x64xf32>
    %28 = arith.select %26, %27, %20 : vector<32x64xi1>, vector<32x64xf32>
    %c64 = arith.constant 64 : index
    %c0_8 = arith.constant 0 : index
    %29 = vector.load %arg2[%c64, %c0_8] : memref<192x256xbf16, #tpu.memory_space<vmem>>, vector<64x256xbf16>
    %cst_9 = arith.constant dense<0.000000e+00> : vector<32x256xf32>
    %30 = tpu.matmul %0, %29, %cst_9 {dimension_numbers = #tpu.dot_dimension_numbers<[1], [0], [0], [1], [0, 0, 1, 1], [], []>} : vector<32x64xbf16>, vector<64x256xbf16>, vector<32x256xf32> -> vector<32x256xf32>
    %31 = arith.truncf %24 : vector<32x64xf32> to vector<32x64xbf16>
    %c0_10 = arith.constant 0 : index
    %c0_11 = arith.constant 0 : index
    %32 = vector.load %arg2[%c0_10, %c0_11] : memref<192x256xbf16, #tpu.memory_space<vmem>>, vector<64x256xbf16>
    %cst_12 = arith.constant dense<0.000000e+00> : vector<32x256xf32>
    %33 = tpu.matmul %31, %32, %cst_12 {dimension_numbers = #tpu.dot_dimension_numbers<[1], [0], [0], [1], [0, 0, 1, 1], [], []>} : vector<32x64xbf16>, vector<64x256xbf16>, vector<32x256xf32> -> vector<32x256xf32>
    %34 = arith.addf %30, %33 : vector<32x256xf32>
    %35 = arith.truncf %28 : vector<32x64xf32> to vector<32x64xbf16>
    %c128 = arith.constant 128 : index
    %c0_13 = arith.constant 0 : index
    %36 = vector.load %arg2[%c128, %c0_13] : memref<192x256xbf16, #tpu.memory_space<vmem>>, vector<64x256xbf16>
    %cst_14 = arith.constant dense<0.000000e+00> : vector<32x256xf32>
    %37 = tpu.matmul %35, %36, %cst_14 {dimension_numbers = #tpu.dot_dimension_numbers<[1], [0], [0], [1], [0, 0, 1, 1], [], []>} : vector<32x64xbf16>, vector<64x256xbf16>, vector<32x256xf32> -> vector<32x256xf32>
    %38 = arith.addf %34, %37 : vector<32x256xf32>
    %c0_15 = arith.constant 0 : index
    %c0_16 = arith.constant 0 : index
    %39 = vector.load %arg3[%c0_15, %c0_16] : memref<1x256xf32, #tpu.memory_space<vmem>>, vector<1x256xf32>
    %40 = vector.broadcast %39 : vector<1x256xf32> to vector<32x256xf32>
    %41 = arith.addf %38, %40 : vector<32x256xf32>
    %42 = vector.extract_strided_slice %41 {offsets = [0, 0], sizes = [32, 128], strides = [1, 1]} : vector<32x256xf32> to vector<32x128xf32>
    %cst_17 = arith.constant 0.000000e+00 : f32
    %43 = vector.broadcast %cst_17 : f32 to vector<32x128xf32>
    %44 = arith.maximumf %42, %43 : vector<32x128xf32>
    %45 = vector.extract_strided_slice %41 {offsets = [0, 128], sizes = [32, 128], strides = [1, 1]} : vector<32x256xf32> to vector<32x128xf32>
    %c8_18 = arith.constant 8 : index
    %c0_19 = arith.constant 0 : index
    %46 = vector.load %arg8[%c8_18, %c0_19] : memref<48x128xf32, #tpu.memory_space<vmem>>, vector<32x128xf32>
    tpu.vector_store %arg8[%c8_18, %c0_19], %44 {strides = array<i32>} : memref<48x128xf32, #tpu.memory_space<vmem>>, vector<32x128xf32>,
    %47 = tpu.iota {dimensions = array<i32: 0>} : vector<32x128xi32>
    %c16_i32_20 = arith.constant 16 : i32
    %c0_i32_21 = arith.constant 0 : i32
    %48 = arith.cmpi eq, %c16_i32_20, %c0_i32_21 : i32
    %c1_i32_22 = arith.constant 1 : i32
    %49 = arith.select %48, %c1_i32_22, %c16_i32_20 : i32
    %50 = vector.broadcast %49 : i32 to vector<32x128xi32>
    %51 = arith.remsi %47, %50 : vector<32x128xi32>
    %c0_i32_23 = arith.constant 0 : i32
    %52 = vector.broadcast %c0_i32_23 : i32 to vector<32x128xi32>
    %53 = arith.cmpi ne, %51, %52 : vector<32x128xi32>
    %c0_i32_24 = arith.constant 0 : i32
    %54 = vector.broadcast %c0_i32_24 : i32 to vector<32x128xi32>
    %55 = arith.cmpi slt, %51, %54 : vector<32x128xi32>
    %c0_i32_25 = arith.constant 0 : i32
    %56 = arith.cmpi slt, %49, %c0_i32_25 : i32
    %57 = vector.broadcast %56 : i1 to vector<32x128xi1>
    %58 = vector.broadcast %57 : vector<32x128xi1> to vector<32x128xi1>
    %59 = arith.xori %55, %58 : vector<32x128xi1>
    %60 = arith.andi %59, %53 : vector<32x128xi1>
    %61 = vector.broadcast %49 : i32 to vector<32x128xi32>
    %62 = arith.addi %51, %61 : vector<32x128xi32>
    %63 = arith.select %60, %62, %51 : vector<32x128xi1>, vector<32x128xi32>
    %cst_26 = arith.constant 0.000000e+00 : f32
    %64 = vector.broadcast %cst_26 : f32 to vector<32x128xf32>
    %c0_i32_27 = arith.constant 0 : i32
    %65 = vector.broadcast %c0_i32_27 : i32 to vector<32x128xi32>
    %66 = arith.cmpi ne, %63, %65 : vector<32x128xi32>
    %c7_28 = arith.constant 7 : index
    %c0_29 = arith.constant 0 : index
    %67 = vector.load %arg8[%c7_28, %c0_29] : memref<48x128xf32, #tpu.memory_space<vmem>>, vector<32x128xf32>
    %68 = arith.select %66, %67, %64 : vector<32x128xi1>, vector<32x128xf32>
    %c15_i32_30 = arith.constant 15 : i32
    %69 = vector.broadcast %c15_i32_30 : i32 to vector<32x128xi32>
    %70 = arith.cmpi ne, %63, %69 : vector<32x128xi32>
    %c9_31 = arith.constant 9 : index
    %c0_32 = arith.constant 0 : index
    %71 = vector.load %arg8[%c9_31, %c0_32] : memref<48x128xf32, #tpu.memory_space<vmem>>, vector<32x128xf32>
    %72 = arith.select %70, %71, %64 : vector<32x128xi1>, vector<32x128xf32>
    %73 = arith.truncf %44 : vector<32x128xf32> to vector<32x128xbf16>
    %c128_33 = arith.constant 128 : index
    %c0_34 = arith.constant 0 : index
    %74 = vector.load %arg4[%c128_33, %c0_34] : memref<384x128xbf16, #tpu.memory_space<vmem>>, vector<128x128xbf16>
    %cst_35 = arith.constant dense<0.000000e+00> : vector<32x128xf32>
    %75 = tpu.matmul %73, %74, %cst_35 {dimension_numbers = #tpu.dot_dimension_numbers<[1], [0], [0], [1], [0, 0, 1, 1], [], []>} : vector<32x128xbf16>, vector<128x128xbf16>, vector<32x128xf32> -> vector<32x128xf32>
    %76 = arith.truncf %68 : vector<32x128xf32> to vector<32x128xbf16>
    %c0_36 = arith.constant 0 : index
    %c0_37 = arith.constant 0 : index
    %77 = vector.load %arg4[%c0_36, %c0_37] : memref<384x128xbf16, #tpu.memory_space<vmem>>, vector<128x128xbf16>
    %cst_38 = arith.constant dense<0.000000e+00> : vector<32x128xf32>
    %78 = tpu.matmul %76, %77, %cst_38 {dimension_numbers = #tpu.dot_dimension_numbers<[1], [0], [0], [1], [0, 0, 1, 1], [], []>} : vector<32x128xbf16>, vector<128x128xbf16>, vector<32x128xf32> -> vector<32x128xf32>
    %79 = arith.addf %75, %78 : vector<32x128xf32>
    %80 = arith.truncf %72 : vector<32x128xf32> to vector<32x128xbf16>
    %c256 = arith.constant 256 : index
    %c0_39 = arith.constant 0 : index
    %81 = vector.load %arg4[%c256, %c0_39] : memref<384x128xbf16, #tpu.memory_space<vmem>>, vector<128x128xbf16>
    %cst_40 = arith.constant dense<0.000000e+00> : vector<32x128xf32>
    %82 = tpu.matmul %80, %81, %cst_40 {dimension_numbers = #tpu.dot_dimension_numbers<[1], [0], [0], [1], [0, 0, 1, 1], [], []>} : vector<32x128xbf16>, vector<128x128xbf16>, vector<32x128xf32> -> vector<32x128xf32>
    %83 = arith.addf %79, %82 : vector<32x128xf32>
    %c0_41 = arith.constant 0 : index
    %c0_42 = arith.constant 0 : index
    %84 = vector.load %arg5[%c0_41, %c0_42] : memref<1x128xf32, #tpu.memory_space<vmem>>, vector<1x128xf32>
    %85 = vector.broadcast %84 : vector<1x128xf32> to vector<32x128xf32>
    %86 = arith.addf %83, %85 : vector<32x128xf32>
    %cst_43 = arith.constant 0.000000e+00 : f32
    %87 = vector.broadcast %cst_43 : f32 to vector<32x128xf32>
    %88 = arith.maximumf %86, %87 : vector<32x128xf32>
    %89 = arith.addf %88, %45 : vector<32x128xf32>
    %cst_44 = arith.constant 0.000000e+00 : f32
    %90 = vector.broadcast %cst_44 : f32 to vector<32x128xf32>
    %91 = arith.maximumf %89, %90 : vector<32x128xf32>
    %c0_45 = arith.constant 0 : index
    %c0_46 = arith.constant 0 : index
    %92 = vector.load %arg6[%c0_45, %c0_46] : memref<32x128xf32, #tpu.memory_space<vmem>>, vector<32x128xf32>
    tpu.vector_store %arg6[%c0_45, %c0_46], %91 {strides = array<i32>} : memref<32x128xf32, #tpu.memory_space<vmem>>, vector<32x128xf32>,
    return
  }
  func.func @transform_0(%arg0: i32) -> (i32, i32) {
    %c0_i32 = arith.constant 0 : i32
    %c0_i32_0 = arith.constant 0 : i32
    return %arg0, %c0_i32 : i32, i32
  }
  func.func @transform_1(%arg0: i32) -> (i32, i32) {
    %c0_i32 = arith.constant 0 : i32
    %c0_i32_0 = arith.constant 0 : i32
    %c0_i32_1 = arith.constant 0 : i32
    return %c0_i32, %c0_i32_0 : i32, i32
  }
  func.func @transform_2(%arg0: i32) -> (i32, i32) {
    %c0_i32 = arith.constant 0 : i32
    %c0_i32_0 = arith.constant 0 : i32
    %c0_i32_1 = arith.constant 0 : i32
    return %c0_i32, %c0_i32_0 : i32, i32
  }
  func.func @transform_3(%arg0: i32) -> (i32, i32) {
    %c0_i32 = arith.constant 0 : i32
    %c0_i32_0 = arith.constant 0 : i32
    %c0_i32_1 = arith.constant 0 : i32
    return %c0_i32, %c0_i32_0 : i32, i32
  }
  func.func @transform_4(%arg0: i32) -> (i32, i32) {
    %c0_i32 = arith.constant 0 : i32
    %c0_i32_0 = arith.constant 0 : i32
    %c0_i32_1 = arith.constant 0 : i32
    return %c0_i32, %c0_i32_0 : i32, i32
  }
  func.func @transform_5(%arg0: i32) -> (i32, i32) {
    %c0_i32 = arith.constant 0 : i32
    %c0_i32_0 = arith.constant 0 : i32
    return %arg0, %c0_i32 : i32, i32
  }
}

</mosaic_0001>

<bundles_post_ra>
// kernel: tile.18
= control target key start
LH: loop header
LB: loop body
LE: loop exit
PB: predicated region body
PF: predicated region fallthrough
CT: control target
= control target key end

     0   :  { %s28_s0 = inlined_call_operand.vmem [shape: f32[8], index: 0, kind: input, shape index: {}]   ;;  %s29_s1 = inlined_call_operand.vmem [shape: f32[16,8], index: 1, kind: output, shape index: {}]  }
   0x1   :  { %v4_v0 = vld [vmem:[%s28_s0] ss:$0 sm:$0xff] }
   0x2   :  { %5 = vst [vmem:[%s29_s1] sm:$0xff] %v4_v0  ;;  %8 = vst [vmem:[%s29_s1 + $0x8] sm:$0xff] %v4_v0 }

// kernel: tile.19
= control target key start
LH: loop header
LB: loop body
LE: loop exit
PB: predicated region body
PF: predicated region fallthrough
CT: control target
= control target key end

     0   :  { %s131_s10 = smov 120   ;;  %s132_s11 = smov 104   ;;  %vm3_vm0 = vcmask 64512   ;;  %vm9_vm1 = vcmask 1048512   ;;  %vm15_vm2 = vcmask 982912   ;;  %vm21_vm3 = vcmask 917312   ;;  %s207_s0 = inlined_call_operand.vmem [shape: f32[16,8], index: 0, kind: input, shape index: {}]   ;;  %s208_s1 = inlined_call_operand.vmem [shape: f32[1,128], index: 1, kind: output, shape index: {}]  }
   0x1   :  { %v101_v0 = vld [vmem:[%s207_s0 + $0xf] sm:$0x1]   ;;  %v103_v1 = vld [vmem:[%s207_s0 + $0xd] sm:$0x1]   ;;  %v102_v2 = vld [vmem:[%s207_s0 + $0xe] sm:$0x1]  }
   0x2   :  { %7 = vrot.lane.b32.xlu0 %v101_v0, %s131_s10  ;;  %19 = vrot.lane.b32.xlu1 %v103_v1, %s132_s11  ;;  %v104_v3 = vld [vmem:[%s207_s0 + $0xc] sm:$0x1]   ;;  %s133_s16 = smov 112   ;;  %s134_s17 = smov 96   ;;  %v105_v4 = vld [vmem:[%s207_s0 + $0xb] sm:$0x1]  }
   0x3   :  { %v106_v5 = vld [vmem:[%s207_s0 + $0xa] sm:$0x1]   ;;  %v2_v6 = vld [vmem:[%s207_s0] sm:$0x1]   ;;  %s135_s24 = smov 88   ;;  %s136_s25 = smov 80  }
   0x4   :  { %4 = vst.msk [vmem:[#allocation0] sm:$0x1] %vm3_vm0, %v2_v6   ;;  %v107_v7 = vld [vmem:[%s207_s0 + $0x9] sm:$0x1]   ;;  %v108_v8 = vld [vmem:[%s207_s0 + $0x8] sm:$0x1]  }
   0x5   :  { %s137_s30 = smov 72   ;;  %s138_s2 = smov 64   ;;  %v109_v9 = vld [vmem:[%s207_s0 + $0x7] sm:$0x1]   ;;  %v110_v10 = vld [vmem:[%s207_s0 + $0x6] sm:$0x1]  }
   0x6   :  { %13 = vrot.lane.b32.xlu0 %v102_v2, %s133_s16  ;;  %25 = vrot.lane.b32.xlu1 %v104_v3, %s134_s17  ;;  %s139_s7 = smov 56   ;;  %s140_s8 = smov 48   ;;  %v111_v11 = vld [vmem:[%s207_s0 + $0x5] sm:$0x1]   ;;  %v112_v12 = vld [vmem:[%s207_s0 + $0x4] sm:$0x1]  }
   0x7   :  { %s141_s13 = smov 40   ;;  %s142_s14 = smov 32   ;;  %v113_v13 = vld [vmem:[%s207_s0 + $0x3] sm:$0x1]   ;;  %v114_v14 = vld [vmem:[%s207_s0 + $0x2] sm:$0x1]  }
   0x8   :  { %s143_s19 = smov 24   ;;  %s144_s20 = smov 16   ;;  %v115_v15 = vld [vmem:[%s207_s0 + $0x1] sm:$0x1]   ;;  %vm27_vm4 = vcmask 851712   ;;  %vm33_vm5 = vcmask 786112  }
   0x9   :  { %s145_s0 = smov 8   ;;  %vm39_vm6 = vcmask 720512   ;;  %vm45_vm7 = vcmask 654912   ;;  %vm51_vm8 = vcmask 589312   ;;  %vm57_vm9 = vcmask 523712  }
   0xa   :  { %31 = vrot.lane.b32.xlu0 %v105_v4, %s135_s24  ;;  %37 = vrot.lane.b32.xlu1 %v106_v5, %s136_s25  ;;  %vm63_vm10 = vcmask 458112   ;;  %vm69_vm11 = vcmask 392512   ;;  %vm75_vm12 = vcmask 326912   ;;  %vm81_vm13 = vcmask 261312  }
   0xb   :  { %vm87_vm14 = vcmask 195712   ;;  %vm93_vm15 = vcmask 130112  }
   0xe   :  { %43 = vrot.lane.b32.xlu0 %v107_v7, %s137_s30  ;;  %49 = vrot.lane.b32.xlu1 %v108_v8, %s138_s2 }
  0x12   :  { %55 = vrot.lane.b32.xlu0 %v109_v9, %s139_s7  ;;  %61 = vrot.lane.b32.xlu1 %v110_v10, %s140_s8 }
  0x16   :  { %67 = vrot.lane.b32.xlu0 %v111_v11, %s141_s13  ;;  %73 = vrot.lane.b32.xlu1 %v112_v12, %s142_s14 }
  0x1a   :  { %79 = vrot.lane.b32.xlu0 %v113_v13, %s143_s19  ;;  %85 = vrot.lane.b32.xlu1 %v114_v14, %s144_s20 }
  0x1e   :  { %91 = vrot.lane.b32.xlu0 %v115_v15, %s145_s0 }
  0x74   :  { %v8_v16 = vpop.permute.xlu0 %7   ;;  %v20_v17 = vpop.permute.xlu1 %19  }
  0x75   :  { %10 = vst.msk [vmem:[#allocation0] sm:$0x1] %vm9_vm1, %v8_v16  }
  0x78   :  { %v14_v18 = vpop.permute.xlu0 %13   ;;  %v26_v19 = vpop.permute.xlu1 %25  }
  0x79   :  { %16 = vst.msk [vmem:[#allocation0] sm:$0x1] %vm15_vm2, %v14_v18  }
  0x7a   :  { %22 = vst.msk [vmem:[#allocation0] sm:$0x1] %vm21_vm3, %v20_v17  }
  0x7b   :  { %28 = vst.msk [vmem:[#allocation0] sm:$0x1] %vm27_vm4, %v26_v19  }
  0x7c   :  { %v32_v20 = vpop.permute.xlu0 %31   ;;  %v38_v21 = vpop.permute.xlu1 %37  }
  0x7d   :  { %34 = vst.msk [vmem:[#allocation0] sm:$0x1] %vm33_vm5, %v32_v20  }
  0x7e   :  { %40 = vst.msk [vmem:[#allocation0] sm:$0x1] %vm39_vm6, %v38_v21  }
  0x80   :  { %v44_v22 = vpop.permute.xlu0 %43   ;;  %v50_v23 = vpop.permute.xlu1 %49  }
  0x81   :  { %46 = vst.msk [vmem:[#allocation0] sm:$0x1] %vm45_vm7, %v44_v22  }
  0x82   :  { %52 = vst.msk [vmem:[#allocation0] sm:$0x1] %vm51_vm8, %v50_v23  }
  0x84   :  { %v56_v24 = vpop.permute.xlu0 %55   ;;  %v62_v25 = vpop.permute.xlu1 %61  }
  0x85   :  { %58 = vst.msk [vmem:[#allocation0] sm:$0x1] %vm57_vm9, %v56_v24  }
  0x86   :  { %64 = vst.msk [vmem:[#allocation0] sm:$0x1] %vm63_vm10, %v62_v25  }
  0x88   :  { %v68_v26 = vpop.permute.xlu0 %67   ;;  %v74_v27 = vpop.permute.xlu1 %73  }
  0x89   :  { %70 = vst.msk [vmem:[#allocation0] sm:$0x1] %vm69_vm11, %v68_v26  }
  0x8a   :  { %76 = vst.msk [vmem:[#allocation0] sm:$0x1] %vm75_vm12, %v74_v27  }
  0x8c   :  { %v80_v28 = vpop.permute.xlu0 %79   ;;  %v86_v29 = vpop.permute.xlu1 %85  }
  0x8d   :  { %82 = vst.msk [vmem:[#allocation0] sm:$0x1] %vm81_vm13, %v80_v28  }
  0x8e   :  { %88 = vst.msk [vmem:[#allocation0] sm:$0x1] %vm87_vm14, %v86_v29  }
  0x90   :  { %v92_v30 = vpop.permute.xlu0 %91  }
  0x91   :  { %94 = vst.msk [vmem:[#allocation0] sm:$0x1] %vm93_vm15, %v92_v30  }
  0x98   :  { %v98_v31 = vld [vmem:[#allocation0] sm:$0x1] }
  0x99   :  { %100 = vst [vmem:[%s208_s1] sm:$0x1] %v98_v31 }

// kernel: skip_connect_forward_nchw.1
= control target key start
LH: loop header
LB: loop body
LE: loop exit
PB: predicated region body
PF: predicated region fallthrough
CT: control target
= control target key end

     0   :  { %v1125_v1 = vmov 0   ;;  %v34_v3 = vlaneseq  ;;  %vm29_vm0 = vcmask 523264   ;;  %vm1126_vm5 = vmmov 1   ;;  %s1407_s1 = inlined_call_operand.vmem [shape: bf16[192,256], index: 1, kind: input, shape index: {}]   ;;  %s1408_s0 = inlined_call_operand.vmem [shape: bf16[32,64], index: 0, kind: input, shape index: {}]   ;;  %s1409_s3 = inlined_call_operand.vmem [shape: bf16[384,128], index: 3, kind: input, shape index: {}]   ;;  %s1410_s2 = inlined_call_operand.vmem [shape: f32[1,256], index: 2, kind: input, shape index: {}]   ;;  %s1411_s4 = inlined_call_operand.vmem [shape: f32[1,128], index: 4, kind: input, shape index: {}]   ;;  %s1412_s5 = inlined_call_operand.vmem [shape: f32[32,128], index: 5, kind: output, shape index: {}]  }
   0x1   :  { %v1063_v0 = vld [vmem:[%s1407_s1 + $0x4] ss:$8 sps:$4 sm:$0xff]   ;;  %207 = vmatprep.mubr.bf16.mxu0 %v1125_v1  ;;  %v1065_v2 = vld [vmem:[%s1407_s1] ss:$8 sps:$4 sm:$0xff]   ;;  %v1066_v4 = vld [vmem:[%s1407_s1 + $0x14] ss:$8 sps:$4 sm:$0xff]  }
   0x2   :  { %175 = vmatprep.subr.bf16.mxu0 %v1063_v0  ;;  %v1068_v5 = vld [vmem:[%s1407_s1 + $0x10] ss:$8 sps:$4 sm:$0xff]   ;;  %v1069_v6 = vld [vmem:[%s1407_s1 + $0x24] ss:$8 sps:$4 sm:$0xff]   ;;  %v1178_v8 = vshrl.u32 %v34_v3, 7 }
   0x3   :  { %176 = vmatpush1.bf16.msra.mxu0 %v1065_v2  ;;  %v1176_v7 = vld [vmem:[%s1408_s0] sm:$0xff]   ;;  %v1072_v12 = vld [vmem:[%s1407_s1 + $0x34] ss:$8 sps:$4 sm:$0xff]   ;;  %v1193_v13 = vld [vmem:[%s1408_s0 + $0x8] sm:$0xff]  }
   0x4   :  { %177 = vmatprep.subr.bf16.mxu0 %v1066_v4  ;;  %v25_v9 = vunpack.c.l.bf16 %v1176_v7  ;;  %v26_v10 = vunpack.c.h.bf16 %v1176_v7  ;;  %v1071_v11 = vld [vmem:[%s1407_s1 + $0x20] ss:$8 sps:$4 sm:$0xff]   ;;  %v43_v14 = vand.u32 15, %v1178_v8  ;;  %v27_v15 = vunpack.c.l.bf16 %v1193_v13  ;;  %v1074_v18 = vld [vmem:[%s1407_s1 + $0x30] ss:$8 sps:$4 sm:$0xff]  }
   0x5   :  { %v28_v16 = vunpack.c.h.bf16 %v1193_v13  ;;  %v37_v17 = vadd.s32 16, %v1178_v8  ;;  %v1077_v19 = vld [vmem:[%s1407_s1 + $0x44] ss:$8 sps:$4 sm:$0xff]   ;;  %v1075_v25 = vld [vmem:[%s1407_s1 + $0x40] ss:$8 sps:$4 sm:$0xff]   ;;  %v36_v39 = vadd.s32 8, %v1178_v8 }
   0x6   :  { %30 = vst.msk [vmem:[#allocation2 + $0x8] sm:$0xff] %vm29_vm0, %v25_v9  ;;  %31 = vst.msk [vmem:[#allocation2 + $0x10] sm:$0xff] %vm29_vm0, %v26_v10  ;;  %vm1207_vm1 = vcmp.ne.s32.totalorder %v43_v14, 0  ;;  %v1080_v27 = vld [vmem:[%s1407_s1 + $0x54] ss:$8 sps:$4 sm:$0xff]   ;;  %v1099_v34 = vld [vmem:[%s1409_s3 + $0x40] sm:$0xff]  }
   0x7   :  { %178 = vmatpush1.bf16.msra.mxu0 %v1068_v5  ;;  %32 = vst.msk [vmem:[#allocation2 + $0x18] sm:$0xff] %vm29_vm0, %v27_v15  ;;  %33 = vst.msk [vmem:[#allocation2 + $0x20] sm:$0xff] %vm29_vm0, %v28_v16  ;;  %v57_v21 = vand.u32 15, %v37_v17  ;;  %v1078_v29 = vld [vmem:[%s1407_s1 + $0x50] ss:$8 sps:$4 sm:$0xff]   ;;  %v1100_v35 = vld [vmem:[%s1409_s3 + $0x48] sm:$0xff]   ;;  %997 = vmatprep.subr.bf16.mxu1 %v1099_v34 }
   0x8   :  { %179 = vmatprep.subr.bf16.mxu0 %v1069_v6  ;;  %v1083_v32 = vld [vmem:[%s1407_s1 + $0x64] ss:$8 sps:$4 sm:$0xff]   ;;  %v1081_v37 = vld [vmem:[%s1407_s1 + $0x60] ss:$8 sps:$4 sm:$0xff]   ;;  %998 = vmatpush3.bf16.msra.mxu1 %v1099_v34  ;;  %v1086_v38 = vld [vmem:[%s1407_s1 + $0x74] ss:$8 sps:$4 sm:$0xff]  }
   0x9   :  { %vm1219_vm2 = vcmp.ne.s32.totalorder %v57_v21, 0  ;;  %999 = vmatprep.subr.bf16.mxu1 %v1100_v35  ;;  %v1101_v40 = vld [vmem:[%s1409_s3 + $0x50] sm:$0xff]   ;;  %v1103_v42 = vld [vmem:[%s1409_s3 + $0x58] sm:$0xff]   ;;  %v1089_v43 = vld [vmem:[%s1407_s1 + $0x84] ss:$8 sps:$4 sm:$0xff]   ;;  %v50_v48 = vand.u32 15, %v36_v39 }
   0xa   :  { %v1084_v41 = vld [vmem:[%s1407_s1 + $0x70] ss:$8 sps:$4 sm:$0xff]   ;;  %v1087_v44 = vld [vmem:[%s1407_s1 + $0x80] ss:$8 sps:$4 sm:$0xff]   ;;  %v1092_v45 = vld [vmem:[%s1407_s1 + $0x94] ss:$8 sps:$4 sm:$0xff]  }
   0xb   :  { %180 = vmatpush1.bf16.msra.mxu0 %v1071_v11  ;;  %v1090_v46 = vld [vmem:[%s1407_s1 + $0x90] ss:$8 sps:$4 sm:$0xff]   ;;  %v1095_v47 = vld [vmem:[%s1407_s1 + $0xa4] ss:$8 sps:$4 sm:$0xff]   ;;  %v1093_v49 = vld [vmem:[%s1407_s1 + $0xa0] ss:$8 sps:$4 sm:$0xff]  }
   0xc   :  { %181 = vmatprep.subr.bf16.mxu0 %v1072_v12  ;;  %1000 = vmatpush3.bf16.msra.mxu1 %v1100_v35  ;;  %v1098_v50 = vld [vmem:[%s1407_s1 + $0xb4] ss:$8 sps:$4 sm:$0xff]   ;;  %vm1281_vm3 = vcmp.ne.s32.totalorder %v50_v48, 15  ;;  %v38_v53 = vadd.s32 24, %v1178_v8  ;;  %v1096_v54 = vld [vmem:[%s1407_s1 + $0xb0] ss:$8 sps:$4 sm:$0xff]   ;;  %vm918_vm6 = vmpackc.low %vm1126_vm5, %vm1207_vm1 }
   0xd   :  { %v91_v22 = vld [vmem:[#allocation2 + $0x7] sm:$0xff]  ;;  %v92_v23 = vld [vmem:[#allocation2 + $0xf] sm:$0xff]  ;;  %1001 = vmatprep.subr.bf16.mxu1 %v1101_v40  ;;  %v1108_v5 = vld [vmem:[%s1409_s3 + $0x18] sm:$0xff]   ;;  %v458_v14 = vsub.s32 0, %v1178_v8  ;;  %v462_v16 = vsub.s32 1, %v1178_v8 }
   0xe   :  { %v95_v24 = vsel %vm1207_vm1, %v91_v22, 0.0  ;;  %v93_v30 = vld [vmem:[#allocation2 + $0x17] sm:$0xff]  ;;  %v94_v31 = vld [vmem:[#allocation2 + $0x1f] sm:$0xff]  ;;  %v103_v55 = vld [vmem:[#allocation2 + $0x9] sm:$0xff]  ;;  %v64_v57 = vand.u32 15, %v38_v53 }
   0xf   :  { %182 = vmatpush1.bf16.msra.mxu0 %v1074_v18  ;;  %v119_v26 = vpack.c.bf16 %v92_v23, %v95_v24  ;;  %v97_v33 = vsel %vm1219_vm2, %v93_v30, 0.0  ;;  %v104_v52 = vld [vmem:[#allocation2 + $0x11] sm:$0xff]  ;;  %v1102_v58 = vld [vmem:[%s1409_s3] sm:$0xff]   ;;  %v1104_v62 = vld [vmem:[%s1409_s3 + $0x8] sm:$0xff]  }
  0x10   :  { %284 = vmatprep.subr.bf16.mxu0 %v1077_v19  ;;  %v120_v36 = vpack.c.bf16 %v94_v31, %v97_v33  ;;  %1002 = vmatpush3.bf16.msra.mxu1 %v1101_v40  ;;  %v108_v56 = vsel %vm1281_vm3, %v104_v52, 0.0  ;;  %vm1297_vm4 = vcmp.ne.s32.totalorder %v64_v57, 15  ;;  %v106_v61 = vld [vmem:[#allocation2 + $0x21] sm:$0xff]  ;;  %v105_v63 = vld [vmem:[#allocation2 + $0x19] sm:$0xff]  ;;  %v1106_v4 = vld [vmem:[%s1409_s3 + $0x10] sm:$0xff]  }
  0x11   :  { %1003 = vmatprep.subr.bf16.mxu1 %v1103_v42  ;;  %v337_v59 = vpack.c.bf16 %v108_v56, %v103_v55  ;;  %v110_v0 = vsel %vm1297_vm4, %v106_v61, 0.0  ;;  %v1105_v3 = vld [vmem:[%s1409_s3 + $0x60] sm:$0xff]   ;;  %v1109_v6 = vld [vmem:[%s1409_s3 + $0x70] sm:$0xff]   ;;  %v1111_v9 = vld [vmem:[%s1409_s3 + $0x78] sm:$0xff]  }
  0x12   :  { %886 = vmatmul.mubr.msk.bf16.vlgmr.msra.gmra.mrb[0].mxu0 %vm29_vm0, %v119_v26  ;;  %v338_v2 = vpack.c.bf16 %v110_v0, %v105_v63  ;;  %v1112_v10 = vld [vmem:[%s1409_s3 + $0x28] sm:$0xff]   ;;  %v1113_v11 = vld [vmem:[%s1409_s3 + $0x80] sm:$0xff]   ;;  %v1114_v12 = vld [vmem:[%s1409_s3 + $0x30] sm:$0xff]  }
  0x13   :  { %285 = vmatpush1.bf16.msra.mxu0 %v1075_v25  ;;  %217 = vmatprep.mubr.bf16.mxu0 %v1125_v1  ;;  %v454_v15 = vld [vmem:[%s1410_s2] sm:$0x3]  ;;  %vm940_vm7 = vmpackc.low %vm1281_vm3, %vm1126_vm5  ;;  %v1118_v53 = vld [vmem:[%s1409_s3 + $0x98] sm:$0xff]  }
  0x14   :  { %286 = vmatprep.subr.bf16.mxu0 %v1080_v27  ;;  %1004 = vmatpush3.bf16.msra.mxu1 %v1103_v42  ;;  %v459_v17 = vrot.slane %v454_v15, %v458_v14  ;;  %v463_v18 = vrot.slane %v454_v15, %v462_v16  ;;  %vm921_vm8 = vmpackc.low %vm1126_vm5, %vm1219_vm2  ;;  %v1119_v51 = vld [vmem:[%s1409_s3 + $0xa0] sm:$0xff]   ;;  %v1120_v28 = vld [vmem:[%s1409_s3 + $0xa8] sm:$0xff]  }
  0x15   :  { %1005 = vmatprep.subr.bf16.mxu1 %v1105_v3  ;;  %v1122_v55 = vld [vmem:[%s1409_s3 + $0xb8] sm:$0xff]   ;;  %vm943_vm9 = vmpackc.low %vm1297_vm4, %vm1126_vm5 }
  0x17   :  { %287 = vmatpush1.bf16.msra.mxu0 %v1078_v29 }
  0x18   :  { %288 = vmatprep.subr.bf16.mxu0 %v1083_v32  ;;  %1006 = vmatpush3.bf16.msra.mxu1 %v1105_v3 }
  0x1a   :  { %887 = vmatmul.mubr.msk.bf16.gmra.mrb[4].mxu0 %vm29_vm0, %v120_v36 }
  0x1b   :  { %289 = vmatpush1.bf16.msra.mxu0 %v1081_v37  ;;  %316 = vmatprep.mubr.bf16.mxu0 %v1125_v1 }
  0x1c   :  { %290 = vmatprep.subr.bf16.mxu0 %v1086_v38 }
  0x1f   :  { %291 = vmatpush1.bf16.msra.mxu0 %v1084_v41 }
  0x20   :  { %393 = vmatprep.subr.bf16.mxu0 %v1089_v43 }
  0x22   :  { %898 = vmatmul.mubr.msk.bf16.vlgmr.msra.gmra.mrb[0].mxu0 %vm29_vm0, %v1176_v7  ;;  %v1110_v7 = vld [vmem:[%s1409_s3 + $0x20] sm:$0xff]  }
  0x23   :  { %394 = vmatpush1.bf16.msra.mxu0 %v1087_v44  ;;  %326 = vmatprep.mubr.bf16.mxu0 %v1125_v1 }
  0x24   :  { %395 = vmatprep.subr.bf16.mxu0 %v1092_v45  ;;  %v1115_v45 = vld [vmem:[%s1409_s3 + $0x88] sm:$0xff]  }
  0x27   :  { %396 = vmatpush1.bf16.msra.mxu0 %v1090_v46  ;;  %v1117_v46 = vld [vmem:[%s1409_s3 + $0x90] sm:$0xff]  }
  0x28   :  { %397 = vmatprep.subr.bf16.mxu0 %v1095_v47 }
  0x2a   :  { %899 = vmatmul.mubr.msk.bf16.gmra.mrb[4].mxu0 %vm29_vm0, %v1193_v13  ;;  %v1116_v13 = vld [vmem:[%s1409_s3 + $0x38] sm:$0xff]  }
  0x2b   :  { %398 = vmatpush1.bf16.msra.mxu0 %v1093_v49  ;;  %425 = vmatprep.mubr.bf16.mxu0 %v1125_v1 }
  0x2c   :  { %399 = vmatprep.subr.bf16.mxu0 %v1098_v50 }
  0x2f   :  { %400 = vmatpush1.bf16.msra.mxu0 %v1096_v54  ;;  %v1121_v54 = vld [vmem:[%s1409_s3 + $0xb0] sm:$0xff]  }
  0x30   :  { %977 = vmatprep.subr.bf16.mxu0 %v1102_v58 }
  0x32   :  { %908 = vmatmul.mubr.msk.bf16.vlgmr.msra.gmra.mrb[0].mxu0 %vm29_vm0, %v337_v59 }
  0x33   :  { %435 = vmatprep.mubr.bf16.mxu0 %v1125_v1  ;;  %978 = vmatpush3.bf16.msra.mxu0 %v1102_v58  ;;  %v1107_v1 = vld [vmem:[%s1409_s3 + $0x68] sm:$0xff]  }
  0x34   :  { %979 = vmatprep.subr.bf16.mxu0 %v1104_v62  ;;  %1007 = vmatprep.subr.bf16.mxu1 %v1107_v1 }
  0x35   :  { %1008 = vmatpush3.bf16.msra.mxu1 %v1107_v1 }
  0x36   :  { %1009 = vmatprep.subr.bf16.mxu1 %v1109_v6 }
  0x37   :  { %980 = vmatpush3.bf16.msra.mxu0 %v1104_v62 }
  0x38   :  { %981 = vmatprep.subr.bf16.mxu0 %v1106_v4 }
  0x39   :  { %1010 = vmatpush3.bf16.msra.mxu1 %v1109_v6 }
  0x3a   :  { %909 = vmatmul.mubr.msk.bf16.gmra.mrb[4].mxu0 %vm29_vm0, %v338_v2  ;;  %1011 = vmatprep.subr.bf16.mxu1 %v1111_v9  ;;  %v946_v2 = vld [vmem:[%s1411_s4] ss:$0 sm:$0xff] }
  0x3b   :  { %982 = vmatpush3.bf16.msra.mxu0 %v1106_v4 }
  0x3c   :  { %983 = vmatprep.subr.bf16.mxu0 %v1108_v5 }
  0x3d   :  { %1012 = vmatpush3.bf16.msra.mxu1 %v1111_v9 }
  0x3e   :  { %1017 = vmatprep.subr.bf16.mxu1 %v1113_v11 }
  0x3f   :  { %984 = vmatpush3.bf16.msra.mxu0 %v1108_v5 }
  0x40   :  { %985 = vmatprep.subr.bf16.mxu0 %v1110_v7 }
  0x43   :  { %986 = vmatpush3.bf16.msra.mxu0 %v1110_v7 }
  0x44   :  { %987 = vmatprep.subr.bf16.mxu0 %v1112_v10 }
  0x47   :  { %988 = vmatpush3.bf16.msra.mxu0 %v1112_v10 }
  0x48   :  { %989 = vmatprep.subr.bf16.mxu0 %v1114_v12 }
  0x4b   :  { %990 = vmatpush3.bf16.msra.mxu0 %v1114_v12 }
  0x4c   :  { %991 = vmatprep.subr.bf16.mxu0 %v1116_v13 }
  0x4f   :  { %992 = vmatpush3.bf16.msra.mxu0 %v1116_v13 }
 0x105   :  { %v427_v19 = vpop.f32.mrb[0].mxu0 }
 0x106   :  { %v466_v21 = vadd.f32 %v459_v17, %v427_v19  ;;  %v429_v22 = vpop.f32.mrb[1].mxu0 }
 0x107   :  { %v1347_v23 = vadd.f32 %v463_v18, %v429_v22  ;;  %v431_v24 = vpop.f32.mrb[2].mxu0 }
 0x108   :  { %v474_v25 = vmax.f32 %v466_v21, 0.0  ;;  %v468_v26 = vadd.f32 %v459_v17, %v431_v24  ;;  %v433_v27 = vpop.f32.mrb[3].mxu0 }
 0x109   :  { %v1349_v29 = vadd.f32 %v463_v18, %v433_v27 }
 0x10a   :  { %478 = vst [vmem:[#allocation3 + $0x8] sm:$0xff] %v474_v25  ;;  %v475_v30 = vmax.f32 %v468_v26, 0.0 }
 0x10c   :  { %479 = vst [vmem:[#allocation3 + $0x10] sm:$0xff] %v475_v30  ;;  %v498_v31 = vpack.c.bf16 %v475_v30, %v474_v25 }
 0x10d   :  { %v437_v32 = vpop.f32.mrb[4].mxu0 }
 0x10e   :  { %v470_v33 = vadd.f32 %v459_v17, %v437_v32  ;;  %v439_v8 = vpop.f32.mrb[5].mxu0  ;;  %1013 = vmatprep.mubr.bf16.mxu1 %v498_v31 }
 0x10f   :  { %v1351_v34 = vadd.f32 %v463_v18, %v439_v8  ;;  %v441_v35 = vpop.f32.mrb[6].mxu0 }
 0x110   :  { %v476_v36 = vmax.f32 %v470_v33, 0.0  ;;  %v472_v37 = vadd.f32 %v459_v17, %v441_v35  ;;  %v443_v38 = vpop.f32.mrb[7].mxu0 }
 0x111   :  { %v1353_v39 = vadd.f32 %v463_v18, %v443_v38  ;;  %v482_v41 = vld [vmem:[#allocation3 + $0x7] sm:$0xff] }
 0x112   :  { %480 = vst [vmem:[#allocation3 + $0x18] sm:$0xff] %v476_v36  ;;  %v477_v40 = vmax.f32 %v472_v37, 0.0 }
 0x113   :  { %v483_v42 = vld [vmem:[#allocation3 + $0xf] sm:$0xff] }
 0x114   :  { %481 = vst [vmem:[#allocation3 + $0x20] sm:$0xff] %v477_v40  ;;  %v499_v43 = vpack.c.bf16 %v477_v40, %v476_v36  ;;  %v919_v44 = vpack.c.bf16 %v483_v42, %v482_v41  ;;  %v490_v47 = vld [vmem:[#allocation3 + $0x9] sm:$0xff] }
 0x116   :  { %993 = vmatprep.mubr.msk.bf16.mxu0 %vm918_vm6, %v919_v44  ;;  %1014 = vmatmul.mubr.bf16.vlgmr.msra.gmra.mrb[0].mxu1 %v499_v43 }
 0x117   :  { %1018 = vmatpush3.bf16.msra.mxu1 %v1113_v11 }
 0x118   :  { %1019 = vmatprep.subr.bf16.mxu1 %v1115_v45 }
 0x119   :  { %v491_v48 = vld [vmem:[#allocation3 + $0x11] sm:$0xff] }
 0x11a   :  { %v941_v20 = vpack.c.bf16 %v491_v48, %v490_v47  ;;  %v484_v49 = vld [vmem:[#allocation3 + $0x17] sm:$0xff] }
 0x11b   :  { %1020 = vmatpush3.bf16.msra.mxu1 %v1115_v45  ;;  %v485_v50 = vld [vmem:[#allocation3 + $0x1f] sm:$0xff] }
 0x11c   :  { %1033 = vmatprep.mubr.msk.bf16.mxu1 %vm940_vm7, %v941_v20  ;;  %1021 = vmatprep.subr.bf16.mxu1 %v1117_v46  ;;  %v922_v52 = vpack.c.bf16 %v485_v50, %v484_v49  ;;  %v492_v56 = vld [vmem:[#allocation3 + $0x19] sm:$0xff]  ;;  %v493_v57 = vld [vmem:[#allocation3 + $0x21] sm:$0xff] }
 0x11d   :  { %v944_v58 = vpack.c.bf16 %v493_v57, %v492_v56 }
 0x11e   :  { %994 = vmatmul.mubr.msk.bf16.vlgmr.msra.gmra.mrb[8].mxu0 %vm921_vm8, %v922_v52 }
 0x11f   :  { %1022 = vmatpush3.bf16.msra.mxu1 %v1117_v46 }
 0x120   :  { %1023 = vmatprep.subr.bf16.mxu1 %v1118_v53 }
 0x123   :  { %1024 = vmatpush3.bf16.msra.mxu1 %v1118_v53 }
 0x124   :  { %1025 = vmatprep.subr.bf16.mxu1 %v1119_v51 }
 0x127   :  { %1026 = vmatpush3.bf16.msra.mxu1 %v1119_v51 }
 0x128   :  { %1027 = vmatprep.subr.bf16.mxu1 %v1120_v28 }
 0x12b   :  { %1028 = vmatpush3.bf16.msra.mxu1 %v1120_v28 }
 0x12c   :  { %1029 = vmatprep.subr.bf16.mxu1 %v1121_v54 }
 0x12f   :  { %1030 = vmatpush3.bf16.msra.mxu1 %v1121_v54 }
 0x130   :  { %1031 = vmatprep.subr.bf16.mxu1 %v1122_v55 }
 0x133   :  { %1032 = vmatpush3.bf16.msra.mxu1 %v1122_v55 }
 0x136   :  { %1034 = vmatmul.mubr.msk.bf16.vlgmr.msra.gmra.mrb[0].mxu1 %vm943_vm9, %v944_v58 }
 0x1f1   :  { %v995_v59 = vpop.f32.mrb[8].mxu0 }
 0x1f2   :  { %v616_v61 = vpop.f32.mrb[9].mxu0 }
 0x1f3   :  { %v996_v62 = vpop.f32.mrb[10].mxu0 }
 0x1f4   :  { %v619_v63 = vpop.f32.mrb[11].mxu0 }
 0x209   :  { %v1035_v0 = vpop.f32.mrb[0].mxu1 }
 0x20a   :  { %v1037_v3 = vadd.f32 %v1035_v0, %v995_v59  ;;  %v828_v4 = vpop.f32.mrb[1].mxu1 }
 0x20b   :  { %v1038_v1 = vadd.f32 %v828_v4, %v616_v61  ;;  %v1036_v5 = vpop.f32.mrb[2].mxu1 }
 0x20c   :  { %v856_v6 = vadd.f32 %v1037_v3, %v946_v2  ;;  %v1039_v7 = vadd.f32 %v1036_v5, %v996_v62  ;;  %v831_v9 = vpop.f32.mrb[3].mxu1 }
 0x20d   :  { %v854_v60 = vadd.f32 %v1038_v1, %v946_v2  ;;  %v1040_v10 = vadd.f32 %v831_v9, %v619_v63 }
 0x20e   :  { %v860_v11 = vmax.f32 %v856_v6, 0.0  ;;  %v857_v12 = vadd.f32 %v1039_v7, %v946_v2 }
 0x20f   :  { %v858_v13 = vmax.f32 %v854_v60, 0.0  ;;  %v855_v14 = vadd.f32 %v1040_v10, %v946_v2 }
 0x210   :  { %v864_v15 = vadd.f32 %v860_v11, %v1351_v34  ;;  %v861_v16 = vmax.f32 %v857_v12, 0.0 }
 0x211   :  { %v862_v17 = vadd.f32 %v858_v13, %v1347_v23  ;;  %v859_v18 = vmax.f32 %v855_v14, 0.0 }
 0x212   :  { %v868_v19 = vmax.f32 %v864_v15, 0.0  ;;  %v865_v21 = vadd.f32 %v861_v16, %v1353_v39 }
 0x213   :  { %v866_v22 = vmax.f32 %v862_v17, 0.0  ;;  %v863_v24 = vadd.f32 %v859_v18, %v1349_v29 }
 0x214   :  { %872 = vst [vmem:[%s1412_s5 + $0x10] sm:$0xff] %v868_v19  ;;  %v869_v25 = vmax.f32 %v865_v21, 0.0 }
 0x215   :  { %870 = vst [vmem:[%s1412_s5] sm:$0xff] %v866_v22  ;;  %v867_v26 = vmax.f32 %v863_v24, 0.0 }
 0x216   :  { %873 = vst [vmem:[%s1412_s5 + $0x18] sm:$0xff] %v869_v25 }
 0x217   :  { %871 = vst [vmem:[%s1412_s5 + $0x8] sm:$0xff] %v867_v26 }

</bundles_post_ra>
